<compile_context>
chip_gen: v6e
topology: v6e:2x2x1
jax: 0.10.0
libtpu: 0.0.40
codegen_flags: <defaults>
</compile_context>

<pallas_src>
import jax
import jax.numpy as jnp
from jax.experimental import pallas as pl
from jax.experimental.pallas import tpu as pltpu


def resblock_kernel(x_ref, c0_ref, c1_ref,
                    w_pw0_ref, w_dw0_ref, b_dw0_ref,
                    w_pw1_ref, w_dw1_ref, b_dw1_ref,
                    w_sc_ref, b_sc_ref,
                    y_ref, nc0_ref, nc1_ref):
    # Grid: (batch b, time tile t); batch block dim is squeezed, so activation refs
    # are 2-D (channels, time) with time on the lane axis (lane-dense).
    t = pl.program_id(1)

    C, Tt = x_ref.shape
    K = w_dw0_ref.shape[1]
    ctx0 = c0_ref.shape[1]            # (K-1)*dilation of depthwise conv 0
    ctx1 = c1_ref.shape[1]            # (K-1)*dilation of depthwise conv 1
    dil0 = ctx0 // (K - 1)
    dil1 = ctx1 // (K - 1)

    # First tile of each batch row: seed the carried left-context from the provided
    # streaming caches.  The new-cache output refs double as the carry buffers and
    # stay VMEM-resident across the whole (sequential) t axis.
    @pl.when(t == 0)
    def _():
        nc0_ref[...] = c0_ref[...]
        nc1_ref[...] = c1_ref[...]

    def elu(v):  # ELU(alpha=1.0); exp on the EUP, select on the VPU (f32 on all chips)
        return jnp.where(v > 0.0, v, jnp.exp(jnp.minimum(v, 0.0)) - 1.0)

    def depthwise(h, cache_ref, w_ref, b_ref, dil, ctx):
        # Causal depthwise conv along the lane (time) axis, entirely in registers:
        # tap k is roll(h, (K-1-k)*dil) with the first frames patched from the cache.
        n_ch = h.shape[0]
        lane = jax.lax.broadcasted_iota(jnp.int32, (n_ch, Tt), 1)
        acc = h * w_ref[:, K - 1:K]                          # zero-shift tap
        for k in range(K - 1):
            s = ctx - k * dil                                # frames of history needed
            tap = pltpu.roll(h, s, axis=1)                   # lanes j >= s are correct
            for j in range(s):                               # patch lanes [0, s) from cache
                col = cache_ref[:, k * dil + j:k * dil + j + 1]      # (n_ch, 1)
                tap = jnp.where(lane == j, col, tap)
            acc = acc + tap * w_ref[:, k:k + 1]
        return acc + b_ref[...]                              # bias (n_ch, 1)

    x = x_ref[...]                                                         # (C, Tt)

    # --- DWSBlock 0: ELU -> 1x1 conv (C->H, no bias) -> depthwise conv (groups=H) ---
    h0 = jnp.dot(w_pw0_ref[...], elu(x), preferred_element_type=jnp.float32)   # (H, Tt)
    d0 = depthwise(h0, nc0_ref, w_dw0_ref, b_dw0_ref, dil0, ctx0)
    nc0_ref[...] = h0[:, Tt - ctx0:]                         # carry new context (registers)

    # --- DWSBlock 1: ELU -> 1x1 conv (H->C, no bias) -> depthwise conv (groups=C) ---
    h1 = jnp.dot(w_pw1_ref[...], elu(d0), preferred_element_type=jnp.float32)  # (C, Tt)
    d1 = depthwise(h1, nc1_ref, w_dw1_ref, b_dw1_ref, dil1, ctx1)
    nc1_ref[...] = h1[:, Tt - ctx1:]

    # --- skip='1x1' shortcut conv + residual add (res_scale=None) ---
    sc = jnp.dot(w_sc_ref[...], x, preferred_element_type=jnp.float32) + b_sc_ref[...]
    y_ref[...] = (d1 + sc).astype(y_ref.dtype)


def resblock_forward(x_bct, cache0, cache1, params, *, time_tile=None):
    """x_bct: (B, C, T) (PyTorch NCT layout, ingested directly).
    cache0: (B, H, (K-1)*dil0).  cache1: (B, C, (K-1)*dil1).
    Effective (post-weight-norm) weights, (out_ch, in_ch) / (ch, K) layouts:
      w_pw0 (H, C)   w_dw0 (H, K)   b_dw0 (H, 1)
      w_pw1 (C, H)   w_dw1 (C, K)   b_dw1 (C, 1)
      w_sc  (C, C)   b_sc  (C, 1)
    Returns (y (B, C, T), [new_cache0, new_cache1]) like the PyTorch module."""
    B, C, T = x_bct.shape
    H, K = params['w_dw0'].shape
    ctx0 = cache0.shape[-1]
    ctx1 = cache1.shape[-1]
    assert K >= 2 and ctx0 % (K - 1) == 0 and ctx1 % (K - 1) == 0

    if time_tile is None:
        # Largest lane-dense tile (multiple of 128) dividing T, capped at 1024.
        # Re-derive the cap per generation (v7x: 64 MiB VMEM vs 128 on v5e/v6e) and
        # set pltpu.CompilerParams(vmem_limit_bytes=...) once tiles get large.
        time_tile = T
        for cand in (1024, 512, 256, 128):
            if T >= cand and T % cand == 0:
                time_tile = cand
                break
    assert T % time_tile == 0
    assert time_tile % 128 == 0 or time_tile == T, \
        "time_tile must be a multiple of 128 (lane-dense) or the whole chunk"
    assert time_tile >= max(ctx0, ctx1), "tile must cover the depthwise context"
    n_t = T // time_tile

    f32 = jnp.float32
    x_bct = x_bct.astype(f32)
    cache0 = cache0.astype(f32)
    cache1 = cache1.astype(f32)

    def const_spec(shape):  # whole weight, same block every step -> VMEM-resident
        return pl.BlockSpec(shape, lambda b, t: (0,) * len(shape))

    y, nc0, nc1 = pl.pallas_call(
        resblock_kernel,
        out_shape=(
            jax.ShapeDtypeStruct((B, C, T), f32),
            jax.ShapeDtypeStruct((B, H, ctx0), f32),
            jax.ShapeDtypeStruct((B, C, ctx1), f32),
        ),
        grid_spec=pltpu.PrefetchScalarGridSpec(
            num_scalar_prefetch=0,
            grid=(B, n_t),                        # t innermost: carries streaming context
            in_specs=[
                pl.BlockSpec((None, C, time_tile), lambda b, t: (b, 0, t)),  # x tile
                pl.BlockSpec((None, H, ctx0), lambda b, t: (b, 0, 0)),       # cache0
                pl.BlockSpec((None, C, ctx1), lambda b, t: (b, 0, 0)),       # cache1
                const_spec((H, C)),    # w_pw0
                const_spec((H, K)),    # w_dw0
                const_spec((H, 1)),    # b_dw0
                const_spec((C, H)),    # w_pw1
                const_spec((C, K)),    # w_dw1
                const_spec((C, 1)),    # b_dw1
                const_spec((C, C)),    # w_sc
                const_spec((C, 1)),    # b_sc
            ],
            out_specs=(
                pl.BlockSpec((None, C, time_tile), lambda b, t: (b, 0, t)),  # y tile
                pl.BlockSpec((None, H, ctx0), lambda b, t: (b, 0, 0)),       # new cache0
                pl.BlockSpec((None, C, ctx1), lambda b, t: (b, 0, 0)),       # new cache1
            ),
        ),
        compiler_params=pltpu.CompilerParams(
            # Batch tiles are independent -> megacore-shardable on v7x; the time axis
            # carries the streaming context -> must stay sequential ('arbitrary').
            dimension_semantics=("parallel", "arbitrary")),
    )(x_bct, cache0, cache1,
      params['w_pw0'], params['w_dw0'], params['b_dw0'],
      params['w_pw1'], params['w_dw1'], params['b_dw1'],
      params['w_sc'], params['b_sc'])

    return y, [nc0, nc1]


def resblock_ref(x, cache0, cache1, p):
    """Pure-JAX reference mirroring the PyTorch ResBlock.forward (NCT layout),
    computed at HIGHEST precision (the kernel uses DEFAULT/MXU precision)."""
    hi = jax.lax.Precision.HIGHEST

    def elu(v):
        return jnp.where(v > 0.0, v, jnp.exp(jnp.minimum(v, 0.0)) - 1.0)

    def conv1x1(v, w, b=None):                 # v (B,Cin,T), w (Cout,Cin)
        y = jnp.einsum('dc,bct->bdt', w, v, precision=hi)
        return y if b is None else y + b.reshape(1, -1, 1)

    def dwconv(v, cache, w, b, dil):           # v (B,C,T), cache (B,C,(K-1)*dil), w (C,K)
        xp = jnp.concatenate([cache, v], axis=-1)
        T = v.shape[-1]
        out = sum(w[:, k].reshape(1, -1, 1) * xp[:, :, k * dil:k * dil + T]
                  for k in range(w.shape[1]))
        out = out + b.reshape(1, -1, 1)
        return out, xp[:, :, T:]               # new cache = last (K-1)*dil frames

    K = p['w_dw0'].shape[1]
    dil0 = cache0.shape[-1] // (K - 1)
    dil1 = cache1.shape[-1] // (K - 1)

    skip = x
    h = conv1x1(elu(x), p['w_pw0'])                        # DWSBlock 0 pointwise
    h, nc0 = dwconv(h, cache0, p['w_dw0'], p['b_dw0'], dil0)
    h = conv1x1(elu(h), p['w_pw1'])                        # DWSBlock 1 pointwise
    h, nc1 = dwconv(h, cache1, p['w_dw1'], p['b_dw1'], dil1)
    y = h + conv1x1(skip, p['w_sc'], p['b_sc'])            # skip='1x1'
    return y, nc0, nc1


if __name__ == "__main__":
    # Small shapes consistent with the module: dim=32, compress=2 -> hidden=16,
    # kernel_size=3, dilations=[1,1], streaming chunk T=256, batch=2.
    # time_tile=128 -> two lane-dense time tiles per batch row (exercises the carry).
    B, DIM, T = 2, 32, 256
    KSZ = 3
    DILS = (1, 1)
    H = DIM // 2
    TIME_TILE = 128
    CTX0 = (KSZ - 1) * DILS[0]
    CTX1 = (KSZ - 1) * DILS[1]

    key = jax.random.PRNGKey(0)
    ks = jax.random.split(key, 12)
    x = jax.random.normal(ks[0], (B, DIM, T), jnp.float32)
    cache0 = jax.random.normal(ks[1], (B, H, CTX0), jnp.float32)
    cache1 = jax.random.normal(ks[2], (B, DIM, CTX1), jnp.float32)

    s = 0.2
    params = dict(
        w_pw0=s * jax.random.normal(ks[3], (H, DIM), jnp.float32),
        w_dw0=s * jax.random.normal(ks[4], (H, KSZ), jnp.float32),
        b_dw0=s * jax.random.normal(ks[5], (H, 1), jnp.float32),
        w_pw1=s * jax.random.normal(ks[6], (DIM, H), jnp.float32),
        w_dw1=s * jax.random.normal(ks[7], (DIM, KSZ), jnp.float32),
        b_dw1=s * jax.random.normal(ks[8], (DIM, 1), jnp.float32),
        w_sc=s * jax.random.normal(ks[9], (DIM, DIM), jnp.float32),
        b_sc=s * jax.random.normal(ks[10], (DIM, 1), jnp.float32),
    )

    y, new_cache = resblock_forward(x, cache0, cache1, params, time_tile=TIME_TILE)
    jax.block_until_ready((y, new_cache))

    y_ref, nc0_ref, nc1_ref = resblock_ref(x, cache0, cache1, params)
    assert y.shape == (B, DIM, T)
    assert new_cache[0].shape == (B, H, CTX0) and new_cache[1].shape == (B, DIM, CTX1)
    # Kernel matmuls run at DEFAULT (MXU bf16-pass) precision vs the HIGHEST-precision
    # reference, so tolerances are at bf16-matmul level.
    assert jnp.allclose(y, y_ref, atol=5e-2, rtol=5e-2), "output mismatch vs reference"
    assert jnp.allclose(new_cache[0], nc0_ref, atol=5e-2, rtol=5e-2), "cache0 mismatch"
    assert jnp.allclose(new_cache[1], nc1_ref, atol=5e-2, rtol=5e-2), "cache1 mismatch"

    print("KERNEL_OK")
</pallas_src>

<mosaic_0001>
module attributes {stable_mosaic.version = 11 : i64} {
  func.func @resblock_kernel(%arg0: i32, %arg1: i32, %arg2: memref<1x32x128xf32, #tpu.memory_space<vmem>>, %arg3: memref<1x16x2xf32, #tpu.memory_space<vmem>>, %arg4: memref<1x32x2xf32, #tpu.memory_space<vmem>>, %arg5: memref<16x32xf32, #tpu.memory_space<vmem>>, %arg6: memref<16x3xf32, #tpu.memory_space<vmem>>, %arg7: memref<16x1xf32, #tpu.memory_space<vmem>>, %arg8: memref<32x16xf32, #tpu.memory_space<vmem>>, %arg9: memref<32x3xf32, #tpu.memory_space<vmem>>, %arg10: memref<32x1xf32, #tpu.memory_space<vmem>>, %arg11: memref<32x32xf32, #tpu.memory_space<vmem>>, %arg12: memref<32x1xf32, #tpu.memory_space<vmem>>, %arg13: memref<1x32x128xf32, #tpu.memory_space<vmem>>, %arg14: memref<1x16x2xf32, #tpu.memory_space<vmem>>, %arg15: memref<1x32x2xf32, #tpu.memory_space<vmem>>) attributes {dimension_semantics = [#tpu.dimension_semantics<parallel>, #tpu.dimension_semantics<arbitrary>], iteration_bounds = array<i64: 2, 2>, scalar_prefetch = 0 : i64, scratch_operands = 0 : i64, tpu.core_type = #tpu.core_type<tc>, window_params = [{transform_indices = @transform_0, window_bounds = array<i64: 1, 32, 128>}, {transform_indices = @transform_1, window_bounds = array<i64: 1, 16, 2>}, {transform_indices = @transform_2, window_bounds = array<i64: 1, 32, 2>}, {pipeline_mode = #tpu.pipeline_mode<synchronous>, transform_indices = @transform_3, window_bounds = array<i64: 16, 32>}, {pipeline_mode = #tpu.pipeline_mode<synchronous>, transform_indices = @transform_4, window_bounds = array<i64: 16, 3>}, {pipeline_mode = #tpu.pipeline_mode<synchronous>, transform_indices = @transform_5, window_bounds = array<i64: 16, 1>}, {pipeline_mode = #tpu.pipeline_mode<synchronous>, transform_indices = @transform_6, window_bounds = array<i64: 32, 16>}, {pipeline_mode = #tpu.pipeline_mode<synchronous>, transform_indices = @transform_7, window_bounds = array<i64: 32, 3>}, {pipeline_mode = #tpu.pipeline_mode<synchronous>, transform_indices = @transform_8, window_bounds = array<i64: 32, 1>}, {pipeline_mode = #tpu.pipeline_mode<synchronous>, transform_indices = @transform_9, window_bounds = array<i64: 32, 32>}, {pipeline_mode = #tpu.pipeline_mode<synchronous>, transform_indices = @transform_10, window_bounds = array<i64: 32, 1>}, {transform_indices = @transform_11, window_bounds = array<i64: 1, 32, 128>}, {transform_indices = @transform_12, window_bounds = array<i64: 1, 16, 2>}, {transform_indices = @transform_13, window_bounds = array<i64: 1, 32, 2>}]} {
    %c0_i32 = arith.constant 0 : i32
    %0 = arith.cmpi eq, %arg1, %c0_i32 : i32
    %1 = arith.extui %0 : i1 to i32
    %c0_i32_0 = arith.constant 0 : i32
    %2 = arith.cmpi ne, %1, %c0_i32_0 : i32
    scf.if %2 {
      %c0_68 = arith.constant 0 : index
      %c0_69 = arith.constant 0 : index
      %c0_70 = arith.constant 0 : index
      %118 = vector.load %arg3[%c0_68, %c0_69, %c0_70] : memref<1x16x2xf32, #tpu.memory_space<vmem>>, vector<1x16x2xf32>
      %119 = vector.shape_cast %118 : vector<1x16x2xf32> to vector<16x2xf32>
      %c0_71 = arith.constant 0 : index
      %c0_72 = arith.constant 0 : index
      %c0_73 = arith.constant 0 : index
      %120 = vector.load %arg14[%c0_71, %c0_72, %c0_73] : memref<1x16x2xf32, #tpu.memory_space<vmem>>, vector<1x16x2xf32>
      %121 = vector.shape_cast %120 : vector<1x16x2xf32> to vector<16x2xf32>
      %122 = vector.shape_cast %119 : vector<16x2xf32> to vector<1x16x2xf32>
      tpu.vector_store %arg14[%c0_71, %c0_72, %c0_73], %122 {strides = array<i32>} : memref<1x16x2xf32, #tpu.memory_space<vmem>>, vector<1x16x2xf32>,
      %c0_74 = arith.constant 0 : index
      %c0_75 = arith.constant 0 : index
      %c0_76 = arith.constant 0 : index
      %123 = vector.load %arg4[%c0_74, %c0_75, %c0_76] : memref<1x32x2xf32, #tpu.memory_space<vmem>>, vector<1x32x2xf32>
      %124 = vector.shape_cast %123 : vector<1x32x2xf32> to vector<32x2xf32>
      %c0_77 = arith.constant 0 : index
      %c0_78 = arith.constant 0 : index
      %c0_79 = arith.constant 0 : index
      %125 = vector.load %arg15[%c0_77, %c0_78, %c0_79] : memref<1x32x2xf32, #tpu.memory_space<vmem>>, vector<1x32x2xf32>
      %126 = vector.shape_cast %125 : vector<1x32x2xf32> to vector<32x2xf32>
      %127 = vector.shape_cast %124 : vector<32x2xf32> to vector<1x32x2xf32>
      tpu.vector_store %arg15[%c0_77, %c0_78, %c0_79], %127 {strides = array<i32>} : memref<1x32x2xf32, #tpu.memory_space<vmem>>, vector<1x32x2xf32>,
    } else {
    }
    %c0 = arith.constant 0 : index
    %c0_1 = arith.constant 0 : index
    %c0_2 = arith.constant 0 : index
    %3 = vector.load %arg2[%c0, %c0_1, %c0_2] : memref<1x32x128xf32, #tpu.memory_space<vmem>>, vector<1x32x128xf32>
    %4 = vector.shape_cast %3 : vector<1x32x128xf32> to vector<32x128xf32>
    %c0_3 = arith.constant 0 : index
    %c0_4 = arith.constant 0 : index
    %5 = vector.load %arg5[%c0_3, %c0_4] : memref<16x32xf32, #tpu.memory_space<vmem>>, vector<16x32xf32>
    %cst = arith.constant 0.000000e+00 : f32
    %6 = vector.broadcast %cst : f32 to vector<32x128xf32>
    %7 = arith.cmpf ogt, %4, %6 : vector<32x128xf32>
    %cst_5 = arith.constant 0.000000e+00 : f32
    %8 = vector.broadcast %cst_5 : f32 to vector<32x128xf32>
    %9 = arith.minimumf %4, %8 : vector<32x128xf32>
    %10 = math.exp %9 : vector<32x128xf32>
    %cst_6 = arith.constant 1.000000e+00 : f32
    %11 = vector.broadcast %cst_6 : f32 to vector<32x128xf32>
    %12 = arith.subf %10, %11 : vector<32x128xf32>
    %13 = arith.select %7, %4, %12 : vector<32x128xi1>, vector<32x128xf32>
    %cst_7 = arith.constant dense<0.000000e+00> : vector<16x128xf32>
    %14 = tpu.matmul %5, %13, %cst_7 {dimension_numbers = #tpu.dot_dimension_numbers<[1], [0], [0], [1], [0, 0, 1, 1], [], []>} : vector<16x32xf32>, vector<32x128xf32>, vector<16x128xf32> -> vector<16x128xf32>
    %15 = tpu.iota {dimensions = array<i32: 1>} : vector<16x128xi32>
    %c0_8 = arith.constant 0 : index
    %c2 = arith.constant 2 : index
    %16 = vector.load %arg6[%c0_8, %c2] : memref<16x3xf32, #tpu.memory_space<vmem>>, vector<16x1xf32>
    %17 = vector.broadcast %16 : vector<16x1xf32> to vector<16x128xf32>
    %18 = arith.mulf %14, %17 : vector<16x128xf32>
    %c2_i32 = arith.constant 2 : i32
    %19 = tpu.dynamic_rotate %14 by %c2_i32 dim 1 : vector<16x128xf32>, i32 -> vector<16x128xf32>
    %c0_9 = arith.constant 0 : index
    %c0_10 = arith.constant 0 : index
    %c0_11 = arith.constant 0 : index
    %20 = vector.load %arg14[%c0_9, %c0_10, %c0_11] : memref<1x16x2xf32, #tpu.memory_space<vmem>>, vector<1x16x1xf32>
    %21 = vector.shape_cast %20 : vector<1x16x1xf32> to vector<16x1xf32>
    %c0_i32_12 = arith.constant 0 : i32
    %22 = vector.broadcast %c0_i32_12 : i32 to vector<16x128xi32>
    %23 = arith.cmpi eq, %15, %22 : vector<16x128xi32>
    %24 = vector.shape_cast %21 : vector<16x1xf32> to vector<16x1xf32>
    %25 = vector.broadcast %24 : vector<16x1xf32> to vector<16x128xf32>
    %26 = arith.select %23, %25, %19 : vector<16x128xi1>, vector<16x128xf32>
    %c0_13 = arith.constant 0 : index
    %c0_14 = arith.constant 0 : index
    %c1 = arith.constant 1 : index
    %27 = vector.load %arg14[%c0_13, %c0_14, %c1] : memref<1x16x2xf32, #tpu.memory_space<vmem>>, vector<1x16x1xf32>
    %28 = vector.shape_cast %27 : vector<1x16x1xf32> to vector<16x1xf32>
    %c1_i32 = arith.constant 1 : i32
    %29 = vector.broadcast %c1_i32 : i32 to vector<16x128xi32>
    %30 = arith.cmpi eq, %15, %29 : vector<16x128xi32>
    %31 = vector.shape_cast %28 : vector<16x1xf32> to vector<16x1xf32>
    %32 = vector.broadcast %31 : vector<16x1xf32> to vector<16x128xf32>
    %33 = arith.select %30, %32, %26 : vector<16x128xi1>, vector<16x128xf32>
    %c0_15 = arith.constant 0 : index
    %c0_16 = arith.constant 0 : index
    %34 = vector.load %arg6[%c0_15, %c0_16] : memref<16x3xf32, #tpu.memory_space<vmem>>, vector<16x1xf32>
    %35 = vector.broadcast %34 : vector<16x1xf32> to vector<16x128xf32>
    %36 = arith.mulf %33, %35 : vector<16x128xf32>
    %37 = arith.addf %18, %36 : vector<16x128xf32>
    %c1_i32_17 = arith.constant 1 : i32
    %38 = tpu.dynamic_rotate %14 by %c1_i32_17 dim 1 : vector<16x128xf32>, i32 -> vector<16x128xf32>
    %c0_18 = arith.constant 0 : index
    %c0_19 = arith.constant 0 : index
    %c1_20 = arith.constant 1 : index
    %39 = vector.load %arg14[%c0_18, %c0_19, %c1_20] : memref<1x16x2xf32, #tpu.memory_space<vmem>>, vector<1x16x1xf32>
    %40 = vector.shape_cast %39 : vector<1x16x1xf32> to vector<16x1xf32>
    %c0_i32_21 = arith.constant 0 : i32
    %41 = vector.broadcast %c0_i32_21 : i32 to vector<16x128xi32>
    %42 = arith.cmpi eq, %15, %41 : vector<16x128xi32>
    %43 = vector.shape_cast %40 : vector<16x1xf32> to vector<16x1xf32>
    %44 = vector.broadcast %43 : vector<16x1xf32> to vector<16x128xf32>
    %45 = arith.select %42, %44, %38 : vector<16x128xi1>, vector<16x128xf32>
    %c0_22 = arith.constant 0 : index
    %c1_23 = arith.constant 1 : index
    %46 = vector.load %arg6[%c0_22, %c1_23] : memref<16x3xf32, #tpu.memory_space<vmem>>, vector<16x1xf32>
    %47 = vector.broadcast %46 : vector<16x1xf32> to vector<16x128xf32>
    %48 = arith.mulf %45, %47 : vector<16x128xf32>
    %49 = arith.addf %37, %48 : vector<16x128xf32>
    %c0_24 = arith.constant 0 : index
    %c0_25 = arith.constant 0 : index
    %50 = vector.load %arg7[%c0_24, %c0_25] : memref<16x1xf32, #tpu.memory_space<vmem>>, vector<16x1xf32>
    %51 = vector.broadcast %50 : vector<16x1xf32> to vector<16x128xf32>
    %52 = arith.addf %49, %51 : vector<16x128xf32>
    %53 = vector.extract_strided_slice %14 {offsets = [0, 126], sizes = [16, 2], strides = [1, 1]} : vector<16x128xf32> to vector<16x2xf32>
    %c0_26 = arith.constant 0 : index
    %c0_27 = arith.constant 0 : index
    %c0_28 = arith.constant 0 : index
    %54 = vector.load %arg14[%c0_26, %c0_27, %c0_28] : memref<1x16x2xf32, #tpu.memory_space<vmem>>, vector<1x16x2xf32>
    %55 = vector.shape_cast %54 : vector<1x16x2xf32> to vector<16x2xf32>
    %56 = vector.shape_cast %53 : vector<16x2xf32> to vector<1x16x2xf32>
    tpu.vector_store %arg14[%c0_26, %c0_27, %c0_28], %56 {strides = array<i32>} : memref<1x16x2xf32, #tpu.memory_space<vmem>>, vector<1x16x2xf32>,
    %c0_29 = arith.constant 0 : index
    %c0_30 = arith.constant 0 : index
    %57 = vector.load %arg8[%c0_29, %c0_30] : memref<32x16xf32, #tpu.memory_space<vmem>>, vector<32x16xf32>
    %cst_31 = arith.constant 0.000000e+00 : f32
    %58 = vector.broadcast %cst_31 : f32 to vector<16x128xf32>
    %59 = arith.cmpf ogt, %52, %58 : vector<16x128xf32>
    %cst_32 = arith.constant 0.000000e+00 : f32
    %60 = vector.broadcast %cst_32 : f32 to vector<16x128xf32>
    %61 = arith.minimumf %52, %60 : vector<16x128xf32>
    %62 = math.exp %61 : vector<16x128xf32>
    %cst_33 = arith.constant 1.000000e+00 : f32
    %63 = vector.broadcast %cst_33 : f32 to vector<16x128xf32>
    %64 = arith.subf %62, %63 : vector<16x128xf32>
    %65 = arith.select %59, %52, %64 : vector<16x128xi1>, vector<16x128xf32>
    %cst_34 = arith.constant dense<0.000000e+00> : vector<32x128xf32>
    %66 = tpu.matmul %57, %65, %cst_34 {dimension_numbers = #tpu.dot_dimension_numbers<[1], [0], [0], [1], [0, 0, 1, 1], [], []>} : vector<32x16xf32>, vector<16x128xf32>, vector<32x128xf32> -> vector<32x128xf32>
    %67 = tpu.iota {dimensions = array<i32: 1>} : vector<32x128xi32>
    %c0_35 = arith.constant 0 : index
    %c2_36 = arith.constant 2 : index
    %68 = vector.load %arg9[%c0_35, %c2_36] : memref<32x3xf32, #tpu.memory_space<vmem>>, vector<32x1xf32>
    %69 = vector.broadcast %68 : vector<32x1xf32> to vector<32x128xf32>
    %70 = arith.mulf %66, %69 : vector<32x128xf32>
    %c2_i32_37 = arith.constant 2 : i32
    %71 = tpu.dynamic_rotate %66 by %c2_i32_37 dim 1 : vector<32x128xf32>, i32 -> vector<32x128xf32>
    %c0_38 = arith.constant 0 : index
    %c0_39 = arith.constant 0 : index
    %c0_40 = arith.constant 0 : index
    %72 = vector.load %arg15[%c0_38, %c0_39, %c0_40] : memref<1x32x2xf32, #tpu.memory_space<vmem>>, vector<1x32x1xf32>
    %73 = vector.shape_cast %72 : vector<1x32x1xf32> to vector<32x1xf32>
    %c0_i32_41 = arith.constant 0 : i32
    %74 = vector.broadcast %c0_i32_41 : i32 to vector<32x128xi32>
    %75 = arith.cmpi eq, %67, %74 : vector<32x128xi32>
    %76 = vector.shape_cast %73 : vector<32x1xf32> to vector<32x1xf32>
    %77 = vector.broadcast %76 : vector<32x1xf32> to vector<32x128xf32>
    %78 = arith.select %75, %77, %71 : vector<32x128xi1>, vector<32x128xf32>
    %c0_42 = arith.constant 0 : index
    %c0_43 = arith.constant 0 : index
    %c1_44 = arith.constant 1 : index
    %79 = vector.load %arg15[%c0_42, %c0_43, %c1_44] : memref<1x32x2xf32, #tpu.memory_space<vmem>>, vector<1x32x1xf32>
    %80 = vector.shape_cast %79 : vector<1x32x1xf32> to vector<32x1xf32>
    %c1_i32_45 = arith.constant 1 : i32
    %81 = vector.broadcast %c1_i32_45 : i32 to vector<32x128xi32>
    %82 = arith.cmpi eq, %67, %81 : vector<32x128xi32>
    %83 = vector.shape_cast %80 : vector<32x1xf32> to vector<32x1xf32>
    %84 = vector.broadcast %83 : vector<32x1xf32> to vector<32x128xf32>
    %85 = arith.select %82, %84, %78 : vector<32x128xi1>, vector<32x128xf32>
    %c0_46 = arith.constant 0 : index
    %c0_47 = arith.constant 0 : index
    %86 = vector.load %arg9[%c0_46, %c0_47] : memref<32x3xf32, #tpu.memory_space<vmem>>, vector<32x1xf32>
    %87 = vector.broadcast %86 : vector<32x1xf32> to vector<32x128xf32>
    %88 = arith.mulf %85, %87 : vector<32x128xf32>
    %89 = arith.addf %70, %88 : vector<32x128xf32>
    %c1_i32_48 = arith.constant 1 : i32
    %90 = tpu.dynamic_rotate %66 by %c1_i32_48 dim 1 : vector<32x128xf32>, i32 -> vector<32x128xf32>
    %c0_49 = arith.constant 0 : index
    %c0_50 = arith.constant 0 : index
    %c1_51 = arith.constant 1 : index
    %91 = vector.load %arg15[%c0_49, %c0_50, %c1_51] : memref<1x32x2xf32, #tpu.memory_space<vmem>>, vector<1x32x1xf32>
    %92 = vector.shape_cast %91 : vector<1x32x1xf32> to vector<32x1xf32>
    %c0_i32_52 = arith.constant 0 : i32
    %93 = vector.broadcast %c0_i32_52 : i32 to vector<32x128xi32>
    %94 = arith.cmpi eq, %67, %93 : vector<32x128xi32>
    %95 = vector.shape_cast %92 : vector<32x1xf32> to vector<32x1xf32>
    %96 = vector.broadcast %95 : vector<32x1xf32> to vector<32x128xf32>
    %97 = arith.select %94, %96, %90 : vector<32x128xi1>, vector<32x128xf32>
    %c0_53 = arith.constant 0 : index
    %c1_54 = arith.constant 1 : index
    %98 = vector.load %arg9[%c0_53, %c1_54] : memref<32x3xf32, #tpu.memory_space<vmem>>, vector<32x1xf32>
    %99 = vector.broadcast %98 : vector<32x1xf32> to vector<32x128xf32>
    %100 = arith.mulf %97, %99 : vector<32x128xf32>
    %101 = arith.addf %89, %100 : vector<32x128xf32>
    %c0_55 = arith.constant 0 : index
    %c0_56 = arith.constant 0 : index
    %102 = vector.load %arg10[%c0_55, %c0_56] : memref<32x1xf32, #tpu.memory_space<vmem>>, vector<32x1xf32>
    %103 = vector.broadcast %102 : vector<32x1xf32> to vector<32x128xf32>
    %104 = arith.addf %101, %103 : vector<32x128xf32>
    %105 = vector.extract_strided_slice %66 {offsets = [0, 126], sizes = [32, 2], strides = [1, 1]} : vector<32x128xf32> to vector<32x2xf32>
    %c0_57 = arith.constant 0 : index
    %c0_58 = arith.constant 0 : index
    %c0_59 = arith.constant 0 : index
    %106 = vector.load %arg15[%c0_57, %c0_58, %c0_59] : memref<1x32x2xf32, #tpu.memory_space<vmem>>, vector<1x32x2xf32>
    %107 = vector.shape_cast %106 : vector<1x32x2xf32> to vector<32x2xf32>
    %108 = vector.shape_cast %105 : vector<32x2xf32> to vector<1x32x2xf32>
    tpu.vector_store %arg15[%c0_57, %c0_58, %c0_59], %108 {strides = array<i32>} : memref<1x32x2xf32, #tpu.memory_space<vmem>>, vector<1x32x2xf32>,
    %c0_60 = arith.constant 0 : index
    %c0_61 = arith.constant 0 : index
    %109 = vector.load %arg11[%c0_60, %c0_61] : memref<32x32xf32, #tpu.memory_space<vmem>>, vector<32x32xf32>
    %cst_62 = arith.constant dense<0.000000e+00> : vector<32x128xf32>
    %110 = tpu.matmul %109, %4, %cst_62 {dimension_numbers = #tpu.dot_dimension_numbers<[1], [0], [0], [1], [0, 0, 1, 1], [], []>} : vector<32x32xf32>, vector<32x128xf32>, vector<32x128xf32> -> vector<32x128xf32>
    %c0_63 = arith.constant 0 : index
    %c0_64 = arith.constant 0 : index
    %111 = vector.load %arg12[%c0_63, %c0_64] : memref<32x1xf32, #tpu.memory_space<vmem>>, vector<32x1xf32>
    %112 = vector.broadcast %111 : vector<32x1xf32> to vector<32x128xf32>
    %113 = arith.addf %110, %112 : vector<32x128xf32>
    %114 = arith.addf %104, %113 : vector<32x128xf32>
    %c0_65 = arith.constant 0 : index
    %c0_66 = arith.constant 0 : index
    %c0_67 = arith.constant 0 : index
    %115 = vector.load %arg13[%c0_65, %c0_66, %c0_67] : memref<1x32x128xf32, #tpu.memory_space<vmem>>, vector<1x32x128xf32>
    %116 = vector.shape_cast %115 : vector<1x32x128xf32> to vector<32x128xf32>
    %117 = vector.shape_cast %114 : vector<32x128xf32> to vector<1x32x128xf32>
    tpu.vector_store %arg13[%c0_65, %c0_66, %c0_67], %117 {strides = array<i32>} : memref<1x32x128xf32, #tpu.memory_space<vmem>>, vector<1x32x128xf32>,
    return
  }
  func.func @transform_0(%arg0: i32, %arg1: i32) -> (i32, i32, i32) {
    %c0_i32 = arith.constant 0 : i32
    %c0_i32_0 = arith.constant 0 : i32
    return %arg0, %c0_i32, %arg1 : i32, i32, i32
  }
  func.func @transform_1(%arg0: i32, %arg1: i32) -> (i32, i32, i32) {
    %c0_i32 = arith.constant 0 : i32
    %c0_i32_0 = arith.constant 0 : i32
    %c0_i32_1 = arith.constant 0 : i32
    return %arg0, %c0_i32, %c0_i32_0 : i32, i32, i32
  }
  func.func @transform_2(%arg0: i32, %arg1: i32) -> (i32, i32, i32) {
    %c0_i32 = arith.constant 0 : i32
    %c0_i32_0 = arith.constant 0 : i32
    %c0_i32_1 = arith.constant 0 : i32
    return %arg0, %c0_i32, %c0_i32_0 : i32, i32, i32
  }
  func.func @transform_3(%arg0: i32, %arg1: i32) -> (i32, i32) {
    %c0_i32 = arith.constant 0 : i32
    %c0_i32_0 = arith.constant 0 : i32
    %c0_i32_1 = arith.constant 0 : i32
    return %c0_i32, %c0_i32_0 : i32, i32
  }
  func.func @transform_4(%arg0: i32, %arg1: i32) -> (i32, i32) {
    %c0_i32 = arith.constant 0 : i32
    %c0_i32_0 = arith.constant 0 : i32
    %c0_i32_1 = arith.constant 0 : i32
    return %c0_i32, %c0_i32_0 : i32, i32
  }
  func.func @transform_5(%arg0: i32, %arg1: i32) -> (i32, i32) {
    %c0_i32 = arith.constant 0 : i32
    %c0_i32_0 = arith.constant 0 : i32
    %c0_i32_1 = arith.constant 0 : i32
    return %c0_i32, %c0_i32_0 : i32, i32
  }
  func.func @transform_6(%arg0: i32, %arg1: i32) -> (i32, i32) {
    %c0_i32 = arith.constant 0 : i32
    %c0_i32_0 = arith.constant 0 : i32
    %c0_i32_1 = arith.constant 0 : i32
    return %c0_i32, %c0_i32_0 : i32, i32
  }
  func.func @transform_7(%arg0: i32, %arg1: i32) -> (i32, i32) {
    %c0_i32 = arith.constant 0 : i32
    %c0_i32_0 = arith.constant 0 : i32
    %c0_i32_1 = arith.constant 0 : i32
    return %c0_i32, %c0_i32_0 : i32, i32
  }
  func.func @transform_8(%arg0: i32, %arg1: i32) -> (i32, i32) {
    %c0_i32 = arith.constant 0 : i32
    %c0_i32_0 = arith.constant 0 : i32
    %c0_i32_1 = arith.constant 0 : i32
    return %c0_i32, %c0_i32_0 : i32, i32
  }
  func.func @transform_9(%arg0: i32, %arg1: i32) -> (i32, i32) {
    %c0_i32 = arith.constant 0 : i32
    %c0_i32_0 = arith.constant 0 : i32
    %c0_i32_1 = arith.constant 0 : i32
    return %c0_i32, %c0_i32_0 : i32, i32
  }
  func.func @transform_10(%arg0: i32, %arg1: i32) -> (i32, i32) {
    %c0_i32 = arith.constant 0 : i32
    %c0_i32_0 = arith.constant 0 : i32
    %c0_i32_1 = arith.constant 0 : i32
    return %c0_i32, %c0_i32_0 : i32, i32
  }
  func.func @transform_11(%arg0: i32, %arg1: i32) -> (i32, i32, i32) {
    %c0_i32 = arith.constant 0 : i32
    %c0_i32_0 = arith.constant 0 : i32
    return %arg0, %c0_i32, %arg1 : i32, i32, i32
  }
  func.func @transform_12(%arg0: i32, %arg1: i32) -> (i32, i32, i32) {
    %c0_i32 = arith.constant 0 : i32
    %c0_i32_0 = arith.constant 0 : i32
    %c0_i32_1 = arith.constant 0 : i32
    return %arg0, %c0_i32, %c0_i32_0 : i32, i32, i32
  }
  func.func @transform_13(%arg0: i32, %arg1: i32) -> (i32, i32, i32) {
    %c0_i32 = arith.constant 0 : i32
    %c0_i32_0 = arith.constant 0 : i32
    %c0_i32_1 = arith.constant 0 : i32
    return %arg0, %c0_i32, %c0_i32_0 : i32, i32, i32
  }
}

</mosaic_0001>

<bundles_post_ra>
// kernel: tpu_custom_call.1
= control target key start
LH: loop header
LB: loop body
LE: loop exit
PB: predicated region body
PF: predicated region fallthrough
CT: control target
= control target key end

     0   :  { %s2253_s0 = inlined_call_operand.vmem [shape: f32[2,32,256], index: 0, kind: input, shape index: {}]   ;;  %s2254_s1 = inlined_call_operand.vmem [shape: f32[2,16,2], index: 1, kind: input, shape index: {}]   ;;  %s2255_s2 = inlined_call_operand.vmem [shape: f32[2,32,2], index: 2, kind: input, shape index: {}]   ;;  %s2256_s3 = inlined_call_operand.vmem [shape: f32[16,32], index: 3, kind: input, shape index: {}]   ;;  %s2257_s4 = inlined_call_operand.vmem [shape: f32[16,3], index: 4, kind: input, shape index: {}]   ;;  %s2258_s5 = inlined_call_operand.vmem [shape: f32[16,1], index: 5, kind: input, shape index: {}]   ;;  %s2259_s6 = inlined_call_operand.vmem [shape: f32[32,16], index: 6, kind: input, shape index: {}]   ;;  %s2260_s7 = inlined_call_operand.vmem [shape: f32[32,3], index: 7, kind: input, shape index: {}]   ;;  %s2261_s8 = inlined_call_operand.vmem [shape: f32[32,1], index: 8, kind: input, shape index: {}]   ;;  %s2262_s9 = inlined_call_operand.vmem [shape: f32[32,32], index: 9, kind: input, shape index: {}]   ;;  %s2263_s10 = inlined_call_operand.vmem [shape: f32[32,1], index: 10, kind: input, shape index: {}]   ;;  %s2264_s11 = inlined_call_operand.hbm [shape: f32[2,32,256], index: 11, kind: output, shape index: {0}]   ;;  %s2265_s12 = inlined_call_operand.vmem [shape: f32[2,16,2], index: 12, kind: output, shape index: {1}]   ;;  %s2266_s13 = inlined_call_operand.vmem [shape: f32[2,32,2], index: 13, kind: output, shape index: {2}]  }
   0x1   :  { %2281 = sst [smem:[#allocation16_spill]] %s2253_s0 }
   0x2   :  { %2282 = sst [smem:[#allocation17_spill]] %s2262_s9 }
   0x3   :  { %2283 = sst [smem:[#allocation18_spill]] %s2264_s11 }
   0x4   :  { %19 = vsyncpa [#allocation4], 0 }
   0x5   :  { %21 = vsyncpa [#allocation4 + $0x1], 0  ;;  %s1805_s25 = smov 0   ;;  %s1807_s26 = smov 0  }
   0x6   :  { %s1809_s27 = smov 0   ;;  %s1811_s28 = smov 0  }
   0x7   :  { %s1813_s29 = smov 0   ;;  %s1815_s30 = smov 0  }
   0x8   :  { %s1817_s14 = smov 0   ;;  %s1819_s15 = smov 0  }
   0x9 LB: > { %2284 = sst [smem:[#allocation6_spill]] %s1696_s25  ;;  %s1426_s16 = sadd.s32 4294967295, %s1724_s15   ;;  %s1724_s15 = sphi %s1819_s15, %s27_s15   ;;  %s1720_s14 = sphi %s1817_s14, %s2314_s14   ;;  %s1716_s30 = sphi %s1815_s30, %s2310_s30   ;;  %s1712_s29 = sphi %s1813_s29, %s2309_s29   ;;  %s1708_s28 = sphi %s1811_s28, %s2308_s28   ;;  %s1704_s27 = sphi %s1809_s27, %s2307_s27   ;;  %s1700_s26 = sphi %s1807_s26, %s2313_s26   ;;  %s1696_s25 = sphi %s1805_s25, %s2312_s25  }
   0xa   : > { %2285 = sst [smem:[#allocation7_spill]] %s1704_s27  ;;  %s1427_s17 = sadd.s32 4294967294, %s1724_s15  }
   0xb   : > { %2286 = sst [smem:[#allocation8_spill]] %s1716_s30  ;;  %s36_s18 = sadd.s32 1, %s1716_s30 }
   0xc   : > { %2287 = sst [smem:[#allocation9_spill]] %s1720_s14  ;;  %p37_p0 = scmp.ge.s32.totalorder %s36_s18, 2 }
   0xd   : > { %2288 = sst [smem:[#allocation10_spill]] %s1724_s15  ;;  %s39_s19 = sadd.s32 1, %s1720_s14 }
   0xe   : > { %p55_p1 = scmp.ne.s32.totalorder %s1704_s27, %s1700_s26  ;;  %p56_p2 = scmp.eq.s32.totalorder %s1724_s15, 0 }
   0xf   : > { %s2316_s18 = smov (%p37_p0, %s36_s18), 0  ;;  %s2318_s19 = smov (!%p37_p0, %s39_s19), %s1720_s14 }
  0x10   : > { %2289 = sst [smem:[#allocation11_spill]] %s2316_s18  ;;  %s44_s20 = ssub.s32 %s1716_s30, %s2316_s18 }
  0x11   : > { %p1857_p3 = por %p56_p2, %p55_p1  ;;  %p41_p4 = scmp.ge.s32.totalorder %s2318_s19, 2 }
  0x12   : > { %p307_p5 = scmp.eq.s32.totalorder %s1426_s16, 3  ;;  %p312_p6 = scmp.ne.s32.totalorder %s1700_s26, %s1696_s25 }
  0x13   : > { %p313_p7 = scmp.eq.s32.totalorder %s1427_s17, 3  ;;  %s2320_s19 = smov (%p41_p4, %s2318_s19), 0 }
  0x14   : > { %2291 = sst [smem:[#allocation12_spill]] %s2320_s19  ;;  %p1865_p8 = por %p307_p5, %p55_p1 }
  0x15   : > { %p1869_p9 = por %p313_p7, %p312_p6  ;;  %s43_s24 = ssub.s32 %s1720_s14, %s2320_s19 }
  0x16   : > { %s2292_s22 = scalar_select %p1865_p8, 1, 0 }
  0x17   : > { %s2294_s23 = scalar_select %p1869_p9, 1, 0 }
  0x18   : > { %2293 = sst [smem:[#allocation13_spill]] %s2292_s22  ;;  %s45_s18 = sor.u32 %s44_s20, %s43_s24 }
  0x19   : > { %2295 = sst [smem:[#allocation14_spill]] %s2294_s23  ;;  %s48_s11 = sadd.s32 1, %s1704_s27 }
  0x1a   : > { %p46_p10 = scmp.eq.s32.totalorder %s45_s18, 0  ;;  %p1429_p11 = scmp.ge.s32.totalorder %s1724_s15, 4 }
  0x1c   : > { %s1877_s9 = scalar_select %p46_p10, %s1704_s27, %s48_s11  }
  0x1d   : > { %405 = sbr.rel (%p1429_p11) target bundleno = 46 (0x2e), region = 48 }
  0x1e   : > { %2296 = sst [smem:[#allocation15_spill]] %s1877_s9 }
  0x22   : > { %408 = sbr.rel (!%p1857_p3) target bundleno = 46 (0x2e), region = 52  ;;  %s410_s16 = sand.u32 (%p1857_p3), 1, %s1704_s27  }
  0x23   : > { %s1431_s17 = sshll.u32 (%p1857_p3), %s1720_s14, 3  ;;  %s1430_s25 = sshll.u32 (%p1857_p3), %s410_s16, 5 }
  0x24   : > { %s414_s22 = sadd.s32 (%p1857_p3), %s1716_s30, %s1431_s17  ;;  %s2297_s0 = sld [smem:[#allocation16_spill]] (%p1857_p3) }
  0x25   : > { %s1432_s23 = sshll.u32 (%p1857_p3), %s414_s22, 3  ;;  %s412_s11 = scalar_lea.vmem (%p1857_p3), [#allocation2], %s1430_s25 }
  0x2a   : > { %s416_s18 = scalar_lea.vmem %s2297_s0, %s1432_s23 }
  0x2b   : > { %v451_v0 = vld [vmem:[%s416_s18] sm:$0xff]  ;;  %v453_v1 = vld [vmem:[%s416_s18 + $0x10] sm:$0xff] }
  0x2c   : > { %v455_v2 = vld [vmem:[%s416_s18 + $0x20] sm:$0xff]  ;;  %452 = vst [vmem:[%s412_s11] sm:$0xff] %v451_v0  ;;  %454 = vst [vmem:[%s412_s11 + $0x8] sm:$0xff] %v453_v1  ;;  %v457_v3 = vld [vmem:[%s416_s18 + $0x30] sm:$0xff] }
  0x2d   : > { %456 = vst [vmem:[%s412_s11 + $0x10] sm:$0xff] %v455_v2  ;;  %458 = vst [vmem:[%s412_s11 + $0x18] sm:$0xff] %v457_v3 }
  0x2e PF: > { %p1433_p12 = scmp.ge.s32.totalorder %s1724_s15, 1  ;;  %p479_p13 = scmp.lt.s32.totalorder %s1724_s15, 5 }
  0x30   : > { %p480_p0 = pnand %p1433_p12, %p479_p13 }
  0x31   : > { %s2278_s19 = sand.u32 (!%p480_p0), 1, %s1700_s26   ;;  %p549_p1 = scmp.lt.s32.totalorder (!%p480_p0), %s1712_s29, 1 }
  0x32   : > { %483 = sbr.rel (%p480_p0) target bundleno = 808 (0x328), region = 98  ;;  %s1434_s25 = sshll.u32 (!%p480_p0), %s2278_s19, 5 }
  0x33   : > { %s488_s15 = scalar_lea.vmem (!%p480_p0), [#allocation2], %s1434_s25  ;;  %p1444_p2 = scmp.ne.s32.totalorder (!%p480_p0), %s1708_s28, 0 }
  0x37   : > { %s550_s21 = scalar_select %p549_p1, %s1712_s29, 1 }
  0x38   : > { %572 = sbr.rel (%p1444_p2) target bundleno = 65 (0x41), region = 106 }
  0x39   : > { %s1466_s22 = sshll.u32 %s550_s21, 4  ;;  %s1467_s23 = sshll.u32 %s550_s21, 5 }
  0x3a   : > { %s553_s17 = scalar_lea.vmem %s2254_s1, %s1466_s22  ;;  %s558_s11 = scalar_lea.vmem %s2255_s2, %s1467_s23 }
  0x3b   : > { %s1904_s30 = scalar_lea.vmem %s2265_s12, %s1466_s22  ;;  %s1909_s19 = scalar_lea.vmem %s2266_s13, %s1467_s23 }
  0x3c   : > { %s1911_s21 = scalar_lea.vmem [#allocation3], %s1434_s25 }
  0x3d   : > { %v573_v4 = vld [vmem:[%s553_s17] sm:$0xff]  ;;  %vm575_vm0 = vcmask 15360   ;;  %v574_v5 = vld [vmem:[%s553_s17 + $0x8] sm:$0xff]  ;;  %v580_v8 = vld [vmem:[%s558_s11 + $0x10] sm:$0xff] }
  0x3e   : > { %v578_v6 = vld [vmem:[%s558_s11] sm:$0xff]  ;;  %576 = vst.msk [vmem:[%s1904_s30] sm:$0xff] %vm575_vm0, %v573_v4  ;;  %577 = vst.msk [vmem:[%s1904_s30 + $0x8] sm:$0xff] %vm575_vm0, %v574_v5  ;;  %v579_v7 = vld [vmem:[%s558_s11 + $0x8] sm:$0xff] }
  0x3f   : > { %582 = vst.msk [vmem:[%s1909_s19] sm:$0xff] %vm575_vm0, %v578_v6  ;;  %v581_v9 = vld [vmem:[%s558_s11 + $0x18] sm:$0xff]  ;;  %583 = vst.msk [vmem:[%s1909_s19 + $0x8] sm:$0xff] %vm575_vm0, %v579_v7 }
  0x40   : > { %584 = vst.msk [vmem:[%s1909_s19 + $0x10] sm:$0xff] %vm575_vm0, %v580_v8  ;;  %585 = vst.msk [vmem:[%s1909_s19 + $0x18] sm:$0xff] %vm575_vm0, %v581_v9 }
  0x41 PF: > { %v1920_v10 = vld [vmem:[%s488_s15 + $0x18] sm:$0xff]  ;;  %v1922_v11 = vld [vmem:[%s488_s15 + $0x10] sm:$0xff]  ;;  %v1924_v12 = vld [vmem:[%s488_s15 + $0x8] sm:$0xff]  ;;  %vm616_vm1 = vcmask 261120   ;;  %v1726_v17 = vmov 2   ;;  %v1727_v27 = vmov 1  }
  0x42   : > { %v599_v13 = vmin.f32 %v1920_v10, 0.0  ;;  %v598_v14 = vmin.f32 %v1922_v11, 0.0  ;;  %v1928_v15 = vld [vmem:[%s488_s15] sm:$0xff]  ;;  %1605 = vset.pattern.permute.xlu1 %v1726_v17  ;;  %v597_v18 = vmin.f32 %v1924_v12, 0.0  ;;  %v701_v20 = vld [vmem:[%s2257_s4 + $0x8] sm:$0xff]  ;;  %1604 = vset.pattern.permute.xlu0 %v1727_v27  ;;  %v1728_v28 = vmov 0  }
  0x43   : > { %v590_v16 = vld [vmem:[%s2256_s3] sm:$0xff]  ;;  %v596_v19 = vmin.f32 %v1928_v15, 0.0  ;;  %709 = vperm.xlu1 %1605, %v701_v20   ;;  %vm595_vm2 = vcmp.gt.f32.partialorder %v1920_v10, 0.0  ;;  %vm594_vm3 = vcmp.gt.f32.partialorder %v1922_v11, 0.0  ;;  %vm593_vm4 = vcmp.gt.f32.partialorder %v1924_v12, 0.0  ;;  %v775_v41 = vld [vmem:[%s2258_s5 + $0x8] sm:$0xff] }
  0x44   : > { %1498 = vmatprep.mubr.msk.f32.mxu0 %vm616_vm1, %v590_v16  ;;  %v606_v21 = vmul.f32 1.442695, %v599_v13  ;;  %v604_v22 = vmul.f32 1.442695, %v598_v14  ;;  %v602_v23 = vmul.f32 1.442695, %v597_v18 }
  0x45   : > { %v600_v24 = vmul.f32 1.442695, %v596_v19  ;;  %v719_v25 = vld [vmem:[%s1904_s30 + $0x8] sm:$0xff]  ;;  %v718_v26 = vld [vmem:[%s1904_s30] sm:$0xff]  ;;  %vm592_vm5 = vcmp.gt.f32.partialorder %v1928_v15, 0.0  ;;  %v916_v45 = vld [vmem:[%s2260_s7 + $0x18] sm:$0xff] }
  0x46   : > { %1620 = vpow2.f32 %v606_v21  ;;  %739 = vperm.xlu0 %1604, %v719_v25   ;;  %v700_v29 = vld [vmem:[%s2257_s4] sm:$0xff]  ;;  %v591_v43 = vld [vmem:[%s2256_s3 + $0x8] sm:$0xff]  ;;  %s1729_s22 = smov 2   ;;  %s1730_s23 = smov 1   ;;  %vm815_vm6 = vcmask 130048   ;;  %v915_v60 = vld [vmem:[%s2260_s7 + $0x10] sm:$0xff]  ;;  %v698_v21 = vlaneseq }
  0x47   : > { %1622 = vpow2.f32 %v604_v22  ;;  %1606 = vset.pattern.permute.xlu1 %v1728_v28  ;;  %v913_v44 = vld [vmem:[%s2260_s7] sm:$0xff]  ;;  %v952_v47 = vld [vmem:[%s1909_s19 + $0x18] sm:$0xff]  ;;  %v950_v48 = vld [vmem:[%s1909_s19 + $0x8] sm:$0xff]  ;;  %vm796_vm9 = vcmask 15360   ;;  %s2298_s14 = sld [smem:[#allocation17_spill]]  ;;  %s2302_s17 = sand.u32 1, %s1700_s26  }
  0x48   : > { %1624 = vpow2.f32 %v602_v23  ;;  %723 = vperm.xlu1 %1606, %v718_v26   ;;  %v949_v46 = vld [vmem:[%s1909_s19] sm:$0xff]  ;;  %v914_v49 = vld [vmem:[%s2260_s7 + $0x8] sm:$0xff]  ;;  %v951_v62 = vld [vmem:[%s1909_s19 + $0x10] sm:$0xff]  ;;  %v2058_v23 = vand.u32 127, %v698_v21  ;;  %s2301_s16 = sld [smem:[#allocation18_spill]]  ;;  %s2198_s20 = scalar_lea.sflag [#allocation4], %s2302_s17 }
  0x49   : > { %1626 = vpow2.f32 %v600_v24  ;;  %v1058_v50 = vld [vmem:[%s2261_s8 + $0x8] sm:$0xff]  ;;  %v1109_v51 = vld [vmem:[%s2263_s10] sm:$0xff]  ;;  %v1059_v13 = vld [vmem:[%s2261_s8 + $0x10] sm:$0xff]  ;;  %s1731_s11 = smov [#allocation3]  }
  0x4a   : > { %735 = vperm.xlu0 %1604, %v718_v26   ;;  %v774_v54 = vld [vmem:[%s2258_s5] sm:$0xff]  ;;  %v1060_v14 = vld [vmem:[%s2261_s8 + $0x18] sm:$0xff]  ;;  %v1110_v18 = vld [vmem:[%s2263_s10 + $0x8] sm:$0xff]  ;;  %vm720_vm7 = vcmp.eq.s32.totalorder %v2058_v23, 0  ;;  %vm733_vm8 = vcmp.eq.s32.totalorder %v2058_v23, 1 }
  0x4b   : > { %v799_v58 = vld [vmem:[%s2259_s6] sm:$0xff] }
  0x4c   : > { %749 = vperm.xlu1 %1606, %v701_v20   ;;  %1505 = vmatprep.mubr.msk.f32.mxu1 %vm815_vm6, %v799_v58  ;;  %v1057_v7 = vld [vmem:[%s2261_s8] sm:$0xff] }
  0x4d   : > { %s2299_s24 = smov %s2298_s14 }
  0x4e   : > { %763 = vperm.xlu0 %1604, %v700_v29  }
  0x50   : > { %1607 = vset.pattern.permute.xlu1 %v1726_v17 }
  0x51   : > { %704 = vperm.xlu1 %1607, %v700_v29  }
  0x52   : > { %1609 = vset.pattern.permute.xlu0 %v1728_v28 }
  0x53   : > { %v1621_v30 = vpop.eup %1620  ;;  %728 = vperm.xlu0 %1609, %v719_v25  }
  0x54   : > { %v1623_v31 = vpop.eup %1622  ;;  %v1448_v32 = vadd.f32 -1.0, %v1621_v30 }
  0x55   : > { %v1625_v33 = vpop.eup %1624  ;;  %v1447_v34 = vadd.f32 -1.0, %v1623_v31  ;;  %1608 = vset.pattern.permute.xlu1 %v1727_v27 }
  0x56   : > { %v1627_v35 = vpop.eup %1626  ;;  %v615_v36 = vsel %vm595_vm2, %v1920_v10, %v1448_v32  ;;  %v1446_v37 = vadd.f32 -1.0, %v1625_v33  ;;  %767 = vperm.xlu1 %1608, %v701_v20  }
  0x57   : > { %1490 = vmatprep.subr.mxu0 %v615_v36  ;;  %v614_v38 = vsel %vm594_vm3, %v1922_v11, %v1447_v34  ;;  %v1445_v39 = vadd.f32 -1.0, %v1627_v35  ;;  %745 = vperm.xlu0 %1609, %v700_v29  }
  0x58   : > { %1491 = vmatpush3.msra.mxu0 %v615_v36  ;;  %v613_v40 = vsel %vm593_vm4, %v1924_v12, %v1446_v37 }
  0x59   : > { %1492 = vmatprep.subr.mxu0 %v614_v38  ;;  %v612_v42 = vsel %vm592_vm5, %v1928_v15, %v1445_v39 }
  0x5a   : > { %1493 = vmatpush3.msra.mxu0 %v614_v38  ;;  %1610 = vset.pattern.permute.xlu1 %v1728_v28 }
  0x5b   : > { %1494 = vmatprep.subr.mxu0 %v613_v40  ;;  %783 = vperm.xlu0 %1609, %v775_v41  }
  0x5c   : > { %1495 = vmatpush3.msra.mxu0 %v613_v40 }
  0x5d   : > { %1496 = vmatprep.subr.mxu0 %v612_v42 }
  0x5e   : > { %1497 = vmatpush3.msra.mxu0 %v612_v42 }
  0x5f   : > { %1499 = vmatmul.mubr.msk.f32.vlgmr.msra.gmra.mxu0 %vm616_vm1, %v591_v43  ;;  %1611 = vset.pattern.permute.xlu0 %v1726_v17 }
  0x60   : > { %919 = vperm.xlu0 %1611, %v913_v44  }
  0x64   : > { %934 = vperm.xlu0 %1611, %v916_v45  }
  0x68   : > { %1614 = vset.pattern.permute.xlu0 %v1727_v27 }
  0x69   : > { %978 = vperm.xlu0 %1614, %v949_v46  }
  0x6d   : > { %990 = vperm.xlu0 %1614, %v952_v47  }
  0x71   : > { %1034 = vperm.xlu0 %1614, %v913_v44  }
  0x75   : > { %1046 = vperm.xlu0 %1614, %v916_v45  }
  0x79   : > { %1618 = vset.pattern.permute.xlu0 %v1728_v28 }
  0x7a   : > { %960 = vperm.xlu0 %1618, %v950_v48  }
  0x7e   : > { %1002 = vperm.xlu0 %1618, %v914_v49  }
  0x82   : > { %1068 = vperm.xlu0 %1618, %v1058_v50  }
  0x86   : > { %1115 = vperm.xlu0 %1618, %v1109_v51  }
  0xbe   : > { %v710_v5 = vpop.permute.xlu1 %709 }
  0xc1   : > { %v2006_v55 = vpop.permute.xlu0 %739 }
  0xc3   : > { %v724_v8 = vpop.permute.xlu1 %723 }
  0xc5   : > { %v2009_v56 = vpop.permute.xlu0 %735 }
  0xc7   : > { %v750_v16 = vpop.permute.xlu1 %749 }
  0xc9   : > { %v2011_v57 = vpop.permute.xlu0 %763 }
  0xcc   : > { %v705_v19 = vpop.permute.xlu1 %704 }
  0xce   : > { %v729_v59 = vpop.permute.xlu0 %728 }
  0xd1   : > { %v768_v22 = vpop.permute.xlu1 %767 }
  0xd2   : > { %v2020_v61 = vpop.permute.xlu0 %745 }
  0xd6   : > { %v784_v63 = vpop.permute.xlu0 %783 }
  0xdb   : > { %v2024_v0 = vpop.permute.xlu0 %919 }
  0xdf   : > { %v2027_v1 = vpop.permute.xlu0 %934 }
  0xe4   : > { %v2029_v2 = vpop.permute.xlu0 %978 }
  0xe8   : > { %v2032_v3 = vpop.permute.xlu0 %990 }
  0xec   : > { %v2034_v4 = vpop.permute.xlu0 %1034 }
  0xf0   : > { %v2037_v6 = vpop.permute.xlu0 %1046 }
  0xf5   : > { %v2043_v9 = vpop.permute.xlu0 %960 }
 0x11f   : > { %v1987_v52 = vpop.f32.mrf.mxu0 }
 0x120   : > { %716 = vrot.lane.b32.xlu1 %v1987_v52, %s1729_s22  ;;  %v713_v29 = vmul.f32 %v1987_v52, %v710_v5  ;;  %v1107_v5 = vld [vmem:[%s2299_s24 + $0x10] sm:$0xff] }
 0x121   : > { %v1991_v53 = vpop.f32.mrf.mxu0 }
 0x122   : > { %790 = vrot.lane.b32.xlu0 %v1991_v53, %s1729_s22  ;;  %v712_v40 = vmul.f32 %v705_v19, %v1991_v53 }
 0x124   : > { %758 = vrot.lane.b32.xlu1 %v1987_v52, %s1730_s23 }
 0x128   : > { %714 = vrot.lane.b32.xlu1 %v1991_v53, %s1729_s22 }
 0x12c   : > { %756 = vrot.lane.b32.xlu1 %v1991_v53, %s1730_s23 }
 0x130   : > { %778 = vperm.xlu1 %1610, %v774_v54  }
 0x134   : > { %792 = vrot.lane.b32.xlu1 %v1987_v52, %s1729_s22 }
 0x135   : > { %1612 = vset.pattern.permute.xlu1 %v1726_v17  ;;  %v2051_v17 = vpop.permute.xlu0 %1002 }
 0x138   : > { %924 = vperm.xlu1 %1612, %v914_v49  }
 0x139   : > { %v2056_v20 = vpop.permute.xlu0 %1068 }
 0x13c   : > { %929 = vperm.xlu1 %1612, %v915_v60  }
 0x13d   : > { %v2060_v24 = vpop.permute.xlu0 %1115 }
 0x140   : > { %1613 = vset.pattern.permute.xlu1 %v1728_v28 }
 0x141   : > { %955 = vperm.xlu1 %1613, %v949_v46  }
 0x145   : > { %965 = vperm.xlu1 %1613, %v951_v62  }
 0x149   : > { %970 = vperm.xlu1 %1613, %v952_v47  }
 0x14d   : > { %1615 = vset.pattern.permute.xlu1 %v1727_v27 }
 0x14e   : > { %982 = vperm.xlu1 %1615, %v950_v48  }
 0x152   : > { %986 = vperm.xlu1 %1615, %v951_v62   ;;  %v802_v62 = vld [vmem:[%s2259_s6 + $0x18] sm:$0xff] }
 0x156   : > { %1616 = vset.pattern.permute.xlu1 %v1728_v28 }
 0x157   : > { %998 = vperm.xlu1 %1616, %v913_v44  }
 0x15b   : > { %1006 = vperm.xlu1 %1616, %v915_v60  }
 0x15f   : > { %1010 = vperm.xlu1 %1616, %v916_v45  }
 0x163   : > { %1617 = vset.pattern.permute.xlu1 %v1727_v27 }
 0x164   : > { %1038 = vperm.xlu1 %1617, %v914_v49  }
 0x168   : > { %1042 = vperm.xlu1 %1617, %v915_v60  }
 0x16c   : > { %1619 = vset.pattern.permute.xlu1 %v1728_v28 }
 0x16d   : > { %1063 = vperm.xlu1 %1619, %v1057_v7  }
 0x171   : > { %1073 = vperm.xlu1 %1619, %v1059_v13  }
 0x175   : > { %1078 = vperm.xlu1 %1619, %v1060_v14  }
 0x179   : > { %1120 = vperm.xlu1 %1619, %v1110_v18   ;;  %v1112_v18 = vld [vmem:[%s2263_s10 + $0x18] sm:$0xff] }
 0x192   : > { %v717_v25 = vpop.permute.xlu1 %716 }
 0x193   : > { %v732_v26 = vsel %vm720_vm7, %v729_v59, %v717_v25 }
 0x194   : > { %v743_v27 = vsel %vm733_vm8, %v2006_v55, %v732_v26  ;;  %v791_v28 = vpop.permute.xlu0 %790 }
 0x195   : > { %v753_v30 = vmul.f32 %v750_v16, %v743_v27  ;;  %797 = vst.msk [vmem:[%s1904_s30] sm:$0xff] %vm796_vm9, %v791_v28  ;;  %v1111_v16 = vld [vmem:[%s2263_s10 + $0x10] sm:$0xff] }
 0x196   : > { %v759_v31 = vpop.permute.xlu1 %758 }
 0x197   : > { %v755_v32 = vadd.f32 %v753_v30, %v713_v29  ;;  %v761_v33 = vsel %vm720_vm7, %v2006_v55, %v759_v31 }
 0x198   : > { %v771_v34 = vmul.f32 %v768_v22, %v761_v33 }
 0x19a   : > { %v773_v35 = vadd.f32 %v771_v34, %v755_v32  ;;  %v715_v36 = vpop.permute.xlu1 %714 }
 0x19b   : > { %v731_v37 = vsel %vm720_vm7, %v724_v8, %v715_v36 }
 0x19c   : > { %v742_v38 = vsel %vm733_vm8, %v2009_v56, %v731_v37  ;;  %v787_v39 = vadd.f32 %v784_v63, %v773_v35  ;;  %v1105_v63 = vld [vmem:[%s2298_s14] sm:$0xff]  ;;  %s1263_s14 = sshll.u32 %s1911_s21, 4  ;;  %s2188_s14 = int_to_ptr.vmem [resolvable:$true] %s1263_s14 }
 0x19d   : > { %v752_v41 = vmul.f32 %v2020_v61, %v742_v38  ;;  %v801_v61 = vld [vmem:[%s2259_s6 + $0x10] sm:$0xff]  ;;  %s1632_s18 = scalar_lea.vmem %s2188_s14, 512 }
 0x19e   : > { %v806_v42 = vmin.f32 %v787_v39, 0.0  ;;  %v757_v44 = vpop.permute.xlu1 %756  ;;  %vm804_vm10 = vcmp.gt.f32.partialorder %v787_v39, 0.0  ;;  %p1633_p3 = scmp.ne.s32.totalorder %s2188_s14, %s1632_s18 }
 0x19f   : > { %v754_v43 = vadd.f32 %v752_v41, %v712_v40  ;;  %v760_v46 = vsel %vm720_vm7, %v2009_v56, %v757_v44 }
 0x1a0   : > { %v809_v45 = vmul.f32 1.442695, %v806_v42  ;;  %v770_v47 = vmul.f32 %v2011_v57, %v760_v46  ;;  %v800_v57 = vld [vmem:[%s2259_s6 + $0x8] sm:$0xff]  ;;  %p1634_p4 = pnand %p1633_p3, %p1865_p8 }
 0x1a2   : > { %1628 = vpow2.f32 %v809_v45  ;;  %v772_v48 = vadd.f32 %v770_v47, %v754_v43  ;;  %p1635_p5 = pneg %p1634_p4 }
 0x1ab   : > { %v779_v49 = vpop.permute.xlu1 %778 }
 0x1ac   : > { %v786_v50 = vadd.f32 %v779_v49, %v772_v48 }
 0x1ae   : > { %v805_v51 = vmin.f32 %v786_v50, 0.0  ;;  %vm803_vm11 = vcmp.gt.f32.partialorder %v786_v50, 0.0 }
 0x1af   : > { %v1629_v52 = vpop.eup %1628  ;;  %v793_v53 = vpop.permute.xlu1 %792 }
 0x1b0   : > { %v807_v54 = vmul.f32 1.442695, %v805_v51  ;;  %798 = vst.msk [vmem:[%s1904_s30 + $0x8] sm:$0xff] %vm796_vm9, %v793_v53  ;;  %v1452_v55 = vadd.f32 -1.0, %v1629_v52  ;;  %s1636_s30 = sshll.u32 %s1731_s11, 4  ;;  %s1637_s30 = int_to_ptr.vmem [resolvable:$false] %s1636_s30 }
 0x1b1   : > { %s1638_s0 = scalar_lea.vmem %s1637_s30, 1024  ;;  %p1639_p6 = scmp.lt.s32.totalorder %s2188_s14, %s1637_s30 }
 0x1b2   : > { %1630 = vpow2.f32 %v807_v54  ;;  %v814_v58 = vsel %vm804_vm10, %v787_v39, %v1452_v55  ;;  %p1640_p7 = scmp.lt.s32.totalorder %s1638_s0, %s1632_s18 }
 0x1b3   : > { %1501 = vmatprep.subr.mxu1 %v814_v58 }
 0x1b4   : > { %1502 = vmatpush3.msra.mxu1 %v814_v58  ;;  %p1641_p10 = por %p1640_p7, %p1639_p6 }
 0x1b6   : > { %p1642_p11 = pnand %p1641_p10, %p1635_p5 }
 0x1bf   : > { %v1631_v59 = vpop.eup %1630 }
 0x1c0   : > { %v1451_v60 = vadd.f32 -1.0, %v1631_v59 }
 0x1c2   : > { %v813_v56 = vsel %vm803_vm11, %v786_v50, %v1451_v60 }
 0x1c3   : > { %1503 = vmatprep.subr.mxu1 %v813_v56 }
 0x1c4   : > { %1504 = vmatpush3.msra.mxu1 %v813_v56 }
 0x1c5   : > { %1506 = vmatmul.mubr.msk.f32.vlgmr.msra.gmra.mxu1 %vm815_vm6, %v800_v57  ;;  %1511 = vmatprep.subr.mxu1 %v1920_v10 }
 0x1c6   : > { %1508 = vmatprep.mubr.msk.f32.mxu1 %vm815_vm6, %v801_v61  ;;  %1512 = vmatpush3.msra.mxu1 %v1920_v10  ;;  %v1106_v10 = vld [vmem:[%s2299_s24 + $0x8] sm:$0xff] }
 0x1c7   : > { %1513 = vmatprep.subr.mxu1 %v1922_v11 }
 0x1c8   : > { %1514 = vmatpush3.msra.mxu1 %v1922_v11  ;;  %v1108_v11 = vld [vmem:[%s2299_s24 + $0x18] sm:$0xff] }
 0x1c9   : > { %1509 = vmatmul.mubr.msk.f32.gmra.mxu1 %vm815_vm6, %v802_v62  ;;  %1515 = vmatprep.subr.mxu1 %v1924_v12 }
 0x1ca   : > { %1516 = vmatpush3.msra.mxu1 %v1924_v12  ;;  %1519 = vmatprep.mubr.msk.f32.mxu1 %vm616_vm1, %v1105_v63  ;;  %v925_v12 = vpop.permute.xlu1 %924 }
 0x1cb   : > { %1517 = vmatprep.subr.mxu1 %v1928_v15 }
 0x1cc   : > { %1518 = vmatpush3.msra.mxu1 %v1928_v15 }
 0x1cd   : > { %1520 = vmatmul.mubr.msk.f32.vlgmr.msra.gmra.mxu1 %vm616_vm1, %v1106_v10 }
 0x1ce   : > { %1522 = vmatprep.mubr.msk.f32.mxu1 %vm616_vm1, %v1107_v5  ;;  %v930_v19 = vpop.permute.xlu1 %929 }
 0x1d1   : > { %1523 = vmatmul.mubr.msk.f32.gmra.mxu1 %vm616_vm1, %v1108_v11 }
 0x1d2   : > { %v956_v21 = vpop.permute.xlu1 %955 }
 0x1d6   : > { %v966_v22 = vpop.permute.xlu1 %965 }
 0x1da   : > { %v971_v25 = vpop.permute.xlu1 %970 }
 0x1de   : > { %v983_v26 = vpop.permute.xlu1 %982 }
 0x1e2   : > { %v987_v27 = vpop.permute.xlu1 %986 }
 0x1e6   : > { %v999_v28 = vpop.permute.xlu1 %998 }
 0x1ea   : > { %v1007_v29 = vpop.permute.xlu1 %1006 }
 0x1ee   : > { %v1011_v30 = vpop.permute.xlu1 %1010 }
 0x1f2   : > { %v1039_v31 = vpop.permute.xlu1 %1038 }
 0x1f6   : > { %v1043_v32 = vpop.permute.xlu1 %1042 }
 0x1fa   : > { %v1064_v33 = vpop.permute.xlu1 %1063 }
 0x1fe   : > { %v1074_v34 = vpop.permute.xlu1 %1073 }
 0x202   : > { %v1079_v35 = vpop.permute.xlu1 %1078 }
 0x206   : > { %v1121_v36 = vpop.permute.xlu1 %1120 }
 0x285   : > { %v1507_v7 = vpop.f32.mrf.mxu1 }
 0x286   : > { %v938_v8 = vmul.f32 %v1507_v7, %v925_v12  ;;  %943 = vrot.lane.b32.xlu0 %v1507_v7, %s1729_s22 }
 0x287   : > { %v894_v13 = vpop.f32.mrf.mxu1 }
 0x288   : > { %941 = vrot.lane.b32.xlu1 %v894_v13, %s1729_s22  ;;  %v937_v45 = vmul.f32 %v2024_v0, %v894_v13 }
 0x289   : > { %v1510_v15 = vpop.f32.mrf.mxu1 }
 0x28a   : > { %1023 = vrot.lane.b32.xlu0 %v1507_v7, %s1730_s23 }
 0x28b   : > { %v904_v14 = vpop.f32.mrf.mxu1 }
 0x28c   : > { %1021 = vrot.lane.b32.xlu1 %v894_v13, %s1730_s23  ;;  %v939_v5 = vmul.f32 %v930_v19, %v904_v14 }
 0x28d   : > { %v1521_v46 = vpop.f32.mrf.mxu1 }
 0x28e   : > { %947 = vrot.lane.b32.xlu0 %v1510_v15, %s1729_s22  ;;  %v1217_v58 = vadd.f32 %v1521_v46, %v1121_v36 }
 0x28f   : > { %v1211_v55 = vpop.f32.mrf.mxu1 }
 0x290   : > { %945 = vrot.lane.b32.xlu1 %v904_v14, %s1729_s22  ;;  %v1212_v62 = vadd.f32 %v1211_v55, %v2060_v24 }
 0x292   : > { %1027 = vrot.lane.b32.xlu0 %v1510_v15, %s1730_s23 }
 0x294   : > { %1025 = vrot.lane.b32.xlu1 %v904_v14, %s1730_s23 }
 0x296   : > { %1125 = vperm.xlu0 %1618, %v1111_v16  }
 0x298   : > { %1130 = vperm.xlu1 %1619, %v1112_v18   ;;  %v1524_v18 = vpop.f32.mrf.mxu1 }
 0x29a   : > { %1089 = vrot.lane.b32.xlu0 %v894_v13, %s1729_s22 }
 0x29c   : > { %1091 = vrot.lane.b32.xlu1 %v1507_v7, %s1729_s22 }
 0x29e   : > { %1093 = vrot.lane.b32.xlu0 %v904_v14, %s1729_s22 }
 0x2a0   : > { %1095 = vrot.lane.b32.xlu1 %v1510_v15, %s1729_s22  ;;  %s1462_s22 = sshll.u32 %s1712_s29, 3 }
 0x2a1   : > { %s1260_s23 = sadd.s32 %s1708_s28, %s1462_s22 }
 0x2a2   : > { %s1463_s27 = sshll.u32 %s1260_s23, 7 }
 0x2a3   : > { %s2186_s28 = scalar_lea.hbm %s2301_s16, %s1463_s27 }
 0x2f8   : > { %v944_v37 = vpop.permute.xlu0 %943 }
 0x2f9   : > { %v974_v38 = vsel %vm720_vm7, %v2043_v9, %v944_v37 }
 0x2fa   : > { %v994_v39 = vsel %vm733_vm8, %v983_v26, %v974_v38  ;;  %v942_v40 = vpop.permute.xlu1 %941 }
 0x2fb   : > { %v1014_v41 = vmul.f32 %v2051_v17, %v994_v39  ;;  %v973_v42 = vsel %vm720_vm7, %v956_v21, %v942_v40  ;;  %v1221_v21 = vpop.f32.mrf.mxu1 }
 0x2fc   : > { %v993_v43 = vsel %vm733_vm8, %v2029_v2, %v973_v42  ;;  %v1024_v44 = vpop.permute.xlu0 %1023 }
 0x2fd   : > { %v1013_v47 = vmul.f32 %v999_v28, %v993_v43  ;;  %v1018_v48 = vadd.f32 %v1014_v41, %v938_v8  ;;  %v1030_v9 = vsel %vm720_vm7, %v983_v26, %v1024_v44 }
 0x2fe   : > { %v1050_v49 = vmul.f32 %v1039_v31, %v1030_v9  ;;  %v1022_v50 = vpop.permute.xlu1 %1021 }
 0x2ff   : > { %v1017_v51 = vadd.f32 %v1013_v47, %v937_v45  ;;  %v1029_v17 = vsel %vm720_vm7, %v2029_v2, %v1022_v50  ;;  %v940_v2 = vmul.f32 %v1510_v15, %v2027_v1 }
 0x300   : > { %v1054_v52 = vadd.f32 %v1050_v49, %v1018_v48  ;;  %v1049_v53 = vmul.f32 %v2034_v4, %v1029_v17  ;;  %v948_v54 = vpop.permute.xlu0 %947 }
 0x301   : > { %v976_v0 = vsel %vm720_vm7, %v971_v25, %v948_v54 }
 0x302   : > { %v1082_v59 = vadd.f32 %v2056_v20, %v1054_v52  ;;  %v1053_v60 = vadd.f32 %v1049_v53, %v1017_v51  ;;  %v996_v56 = vsel %vm733_vm8, %v2032_v3, %v976_v0  ;;  %v946_v57 = vpop.permute.xlu1 %945 }
 0x303   : > { %v1016_v61 = vmul.f32 %v1011_v30, %v996_v56  ;;  %v975_v4 = vsel %vm720_vm7, %v966_v22, %v946_v57 }
 0x304   : > { %v1231_v63 = vadd.f32 %v1217_v58, %v1082_v59  ;;  %v1081_v10 = vadd.f32 %v1064_v33, %v1053_v60  ;;  %v995_v20 = vsel %vm733_vm8, %v987_v27, %v975_v4  ;;  %v1028_v1 = vpop.permute.xlu0 %1027 }
 0x305   : > { %v1015_v11 = vmul.f32 %v1007_v29, %v995_v20  ;;  %v1020_v12 = vadd.f32 %v1016_v61, %v940_v2  ;;  %v1032_v24 = vsel %vm720_vm7, %v2032_v3, %v1028_v1 }
 0x306   : > { %1235 = vst [vmem:[%s1911_s21 + $0x8] sm:$0xff] %v1231_v63  ;;  %v1230_v7 = vadd.f32 %v1212_v62, %v1081_v10  ;;  %v1026_v8 = vpop.permute.xlu1 %1025  ;;  %v1052_v14 = vmul.f32 %v2037_v6, %v1032_v24 }
 0x307   : > { %v1019_v13 = vadd.f32 %v1015_v11, %v939_v5  ;;  %v1031_v15 = vsel %vm720_vm7, %v987_v27, %v1026_v8 }
 0x308   : > { %1234 = vst [vmem:[%s1911_s21] sm:$0xff] %v1230_v7  ;;  %v1051_v16 = vmul.f32 %v1043_v32, %v1031_v15  ;;  %v1056_v22 = vadd.f32 %v1052_v14, %v1020_v12 }
 0x30a   : > { %v1055_v19 = vadd.f32 %v1051_v16, %v1019_v13  ;;  %v1084_v28 = vadd.f32 %v1079_v35, %v1056_v22 }
 0x30c   : > { %v1083_v26 = vadd.f32 %v1074_v34, %v1055_v19 }
 0x311   : > { %v1126_v25 = vpop.permute.xlu0 %1125 }
 0x312   : > { %v1222_v27 = vadd.f32 %v1221_v21, %v1126_v25 }
 0x313   : > { %v1131_v3 = vpop.permute.xlu1 %1130 }
 0x314   : > { %v1232_v23 = vadd.f32 %v1222_v27, %v1083_v26  ;;  %v1227_v29 = vadd.f32 %v1524_v18, %v1131_v3 }
 0x315   : > { %v1090_v6 = vpop.permute.xlu0 %1089 }
 0x316   : > { %1236 = vst [vmem:[%s1911_s21 + $0x10] sm:$0xff] %v1232_v23  ;;  %v1233_v30 = vadd.f32 %v1227_v29, %v1084_v28  ;;  %1101 = vst.msk [vmem:[%s1909_s19] sm:$0xff] %vm796_vm9, %v1090_v6 }
 0x317   : > { %v1092_v31 = vpop.permute.xlu1 %1091 }
 0x318   : > { %1237 = vst [vmem:[%s1911_s21 + $0x18] sm:$0xff] %v1233_v30  ;;  %1102 = vst.msk [vmem:[%s1909_s19 + $0x8] sm:$0xff] %vm796_vm9, %v1092_v31 }
 0x319   : > { %v1094_v32 = vpop.permute.xlu0 %1093 }
 0x31a   : > { %1645 = shalt.err (!%p1642_p11)
}
 0x31b   : > { %s1646_s21 = scalar_lea.hbm %s2186_s28, 512  ;;  %s1650_s23 = scalar_lea.hbm %s2301_s16, 2048 }
 0x31c   : > { %p1647_p12 = scmp.ne.s32.totalorder %s2186_s28, %s1646_s21  ;;  %p1651_p1 = scmp.lt.s32.totalorder %s2186_s28, %s2301_s16 }
 0x31d   : > { %p1652_p2 = scmp.lt.s32.totalorder %s1650_s23, %s1646_s21 }
 0x31e   : > { %p1648_p13 = pnand %p1647_p12, %p1865_p8 }
 0x31f   : > { %p1653_p3 = por %p1652_p2, %p1651_p1 }
 0x320   : > { %p1649_p0 = pneg %p1648_p13 }
 0x322   : > { %p1654_p4 = pnand %p1653_p3, %p1649_p0 }
 0x324   : > { %1657 = shalt.err (!%p1654_p4)
}
 0x325   : > { %s1732_s25 = smov 128   ;;  %s1733_s17 = smov 256   ;;  %1103 = vst.msk [vmem:[%s1909_s19 + $0x10] sm:$0xff] %vm796_vm9, %v1094_v32  ;;  %v1096_v33 = vpop.permute.xlu1 %1095 }
 0x326   : > { %s1734_s18 = smov 8   ;;  %1104 = vst.msk [vmem:[%s1909_s19 + $0x18] sm:$0xff] %vm796_vm9, %v1096_v33 }
 0x327   : > { %1525 = dma.vmem_to_hbm [thread:$0]  (%p1865_p8), %s2188_s14, 512, %s2186_s28, %s2198_s20, %s1732_s25, %s1733_s17, %s1734_s18  }
 0x328 PF: > { %s2303_s11 = sld [smem:[#allocation10_spill]] }
 0x329   : > { %s2304_s30 = sld [smem:[#allocation6_spill]] }
 0x32e   : > { %p1531_p5 = scmp.ge.s32.totalorder %s2303_s11, 2 }
 0x32f   : > { %s1284_s21 = sand.u32 1, %s2304_s30  }
 0x330   : > { %p1528_p6 = pnand %p1531_p5, %p1869_p9  ;;  %s1285_s9 = scalar_lea.sflag [#allocation4], %s1284_s21 }
 0x332   : > { %p1529_p7 = pneg %p1528_p6 }
 0x334   : > { %1691 = dma.done.wait (%p1529_p7), %s1285_s9, 512  }
 0x335   : > { %1693 = vsyncadd (%p1529_p7), %s1285_s9, 4294966784  ;;  %s27_s15 = sadd.s32 1, %s2303_s11   ;;  %s2306_s14 = sld [smem:[#allocation7_spill]] }
 0x336   : > { %p24_p8 = scmp.ge.s32.totalorder %s27_s15, 6   ;;  %s2307_s27 = sld [smem:[#allocation15_spill]] }
 0x337   : > { %s2308_s28 = sld [smem:[#allocation8_spill]]  ;;  %s2312_s25 = smov %s1700_s26 }
 0x338   : > { %s2309_s29 = sld [smem:[#allocation9_spill]] }
 0x339   : > { %s2310_s30 = sld [smem:[#allocation11_spill]] }
 0x33a   : > { %s2311_s19 = sld [smem:[#allocation12_spill]] }
 0x33b   : > { %s2313_s26 = smov %s2306_s14 }
 0x33c   :  { %26 = sbr.rel (!%p24_p8) target bundleno = 9 (0x9), region = 176 }
 0x340   : > { %s2314_s14 = smov %s2311_s19 }
 0x341   :  { %1306 = vsyncpa [#allocation4], 1 }
 0x342   :  { %1308 = vsyncpa [#allocation4 + $0x1], 1 }

</bundles_post_ra>
